<compile_context>
chip_gen: v6e
topology: v6e:2x2x1
jax: 0.10.0
libtpu: 0.0.40
codegen_flags: <defaults>
</compile_context>

<pallas_src>
import jax
import jax.numpy as jnp
from jax.experimental import pallas as pl
from jax.experimental.pallas import tpu as pltpu


_INV_SQRT2 = 0.7071067811865476


def _gelu_erf(x):
    """erf-based GELU (torch.nn.GELU default), Abramowitz & Stegun 7.1.26 erf.

    The rational term's divide is routed to the EUP with pl.reciprocal.
    """
    z = x * _INV_SQRT2
    a = jnp.abs(z)
    t = pl.reciprocal(1.0 + 0.3275911 * a, approx=True)
    poly = t * (0.254829592 + t * (-0.284496736 + t * (1.421413741
               + t * (-1.453152027 + t * 1.061405429))))
    erf_abs = 1.0 - poly * jnp.exp(-a * a)
    erf = jnp.where(z >= 0.0, erf_abs, -erf_abs)
    return 0.5 * x * (1.0 + erf)


def _make_kernel(Cin_p, W, Tr, ks):
    pad = ks // 2
    TrW = Tr * W

    def kernel(x_ref, w_ref, a_ref, c_ref, o_ref, im2col_ref):
        # x_ref   : (Cin_p, Tr*W + 2*pad*(W+1))  flat row-window incl. halo (bf16)
        # w_ref   : (Cout_t, ks*ks*Cin_p)        bf16
        # a_ref   : (Cout_t, 1) f32  folded BN scale
        # c_ref   : (Cout_t, 1) f32  folded BN shift (+ conv bias)
        # o_ref   : (Cout_t, Tr*W)
        # im2col  : (ks*ks*Cin_p, Tr*W) bf16 VMEM scratch
        co = pl.program_id(2)

        # Build the im2col slab once per (batch, row-tile); reused for every
        # Cout tile.  co is the innermost, 'arbitrary' (never core-split) axis,
        # so co == 0 always runs first on the core that owns this (b, t).
        @pl.when(co == 0)
        def _build_im2col():
            # Column index of every output position: one (1, Tr*W) int pass.
            col = jax.lax.broadcasted_iota(jnp.int32, (1, TrW), 1) % W
            masks = {}
            for d in range(-pad, pad + 1):
                if d != 0:
                    masks[d] = jnp.logical_and(col + d >= 0, col + d < W)
            for dy in range(ks):
                for dx in range(ks):
                    start = dy * W + dx                 # static lane offset
                    xs = x_ref[:, start:start + TrW]    # (Cin_p, Tr*W) shifted
                    d = dx - pad
                    if d != 0:
                        # Horizontal taps wrap across row boundaries in the
                        # flat layout; zero the wrapped columns.
                        xs = jnp.where(masks[d], xs, jnp.zeros_like(xs))
                    r0 = (dy * ks + dx) * Cin_p
                    im2col_ref[r0:r0 + Cin_p, :] = xs

        # One big-K GEMM on the MXU (K = ks*ks*Cin_p), f32 accumulation.
        acc = jnp.dot(w_ref[...], im2col_ref[...],
                      preferred_element_type=jnp.float32)
        # Fused conv-bias + BatchNorm(eval) scale/shift + GELU, single store.
        y = acc * a_ref[...] + c_ref[...]
        o_ref[...] = _gelu_erf(y).astype(o_ref.dtype)

    return kernel


def _divisors(n):
    return [d for d in range(1, n + 1) if n % d == 0]


def _vmem_budget_bytes():
    try:
        cap = int(pltpu.get_tpu_info().vmem_capacity_bytes)
    except Exception:
        cap = 128 * 1024 * 1024
    # ~25% headroom (=> ~48 MiB on v7x's 64 MiB parts, 96 MiB on v5e/v6e).
    return min((cap * 3) // 4, 96 * 1024 * 1024)


def _choose_tiles(Cin_p, Cout, H, W, ks, c_bytes, o_bytes, vmem_limit,
                  row_tile=None, cout_tile=None):
    pad = ks // 2
    K = ks * ks * Cin_p
    F = pad * (W + 1)

    if cout_tile is None:
        if Cout <= 256:
            cout_tile = Cout
        else:
            cands = [d for d in _divisors(Cout) if d % 8 == 0 and d <= 256]
            cout_tile = max(cands) if cands else Cout
    n_co = Cout // cout_tile

    def footprint(tr):
        trw = tr * W
        lw = trw + 2 * F
        b = 2 * Cin_p * lw * c_bytes                             # input x2 bufs
        b += K * trw * c_bytes                                   # im2col scratch
        b += (1 if n_co == 1 else 2) * cout_tile * K * c_bytes   # weights
        b += 2 * cout_tile * trw * o_bytes                       # output x2 bufs
        b += cout_tile * trw * 4                                 # f32 GEMM result
        return b

    if row_tile is None:
        budget = vmem_limit - 4 * 1024 * 1024
        cands = [d for d in _divisors(H) if (d * W) % 128 == 0 or d == H]
        cands.sort(reverse=True)            # biggest tile that fits wins
        row_tile = cands[-1]
        for tr in cands:
            if footprint(tr) <= budget:
                row_tile = tr
                break
    return row_tile, cout_tile


def aconv_forward(x, weight, bias, gamma, beta, running_mean, running_var, *,
                  eps=1e-5, stride=(1, 1), compute_dtype=jnp.bfloat16,
                  out_dtype=None, row_tile=None, cout_tile=None):
    """AConv forward: Conv2d(ks, stride=1, padding=ks//2) + BatchNorm2d(eval) + GELU.

    x      : (B, Cin, H, W) NCHW
    weight : (Cout, Cin, ks, ks) PyTorch Conv2d layout;  bias: (Cout,)
    gamma, beta, running_mean, running_var : (Cout,) BatchNorm parameters
    returns: (B, Cout, H, W) in `out_dtype` (default x.dtype).
    """
    B, Cin, H, W = x.shape
    Cout, Cin_w, ks, ks2 = weight.shape
    assert Cin_w == Cin and ks == ks2 and ks % 2 == 1, "odd square kernel expected"
    assert tuple(stride) == (1, 1), "only stride (1,1) implemented"
    # TODO(synk): stride != (1,1) and training-mode BatchNorm (batch statistics)
    # are not implemented; this matches eval-mode AConv with the default stride.
    pad = ks // 2
    assert H > pad and W > pad
    HW = H * W
    out_dtype = x.dtype if out_dtype is None else out_dtype
    c_bytes = jnp.dtype(compute_dtype).itemsize
    o_bytes = jnp.dtype(out_dtype).itemsize

    # Pad Cin to the sublane-packing granularity so all im2col stores and the
    # GEMM contraction are tile-aligned (zero channels contribute zero).
    sub = 16 if c_bytes == 2 else 8
    Cin_p = ((Cin + sub - 1) // sub) * sub
    K = ks * ks * Cin_p

    vmem_limit = _vmem_budget_bytes()
    Tr, Cout_t = _choose_tiles(Cin_p, Cout, H, W, ks, c_bytes, o_bytes,
                               vmem_limit, row_tile=row_tile, cout_tile=cout_tile)
    assert H % Tr == 0 and Cout % Cout_t == 0
    n_t = H // Tr
    n_co = Cout // Cout_t
    TrW = Tr * W
    assert n_t == 1 or TrW % 128 == 0, "row tile must keep Tr*W a multiple of 128"
    F = pad * (W + 1)              # flat halo on each side of a row window
    L = TrW + 2 * F                # flat window length

    # --- Parameter prep (tiny) -------------------------------------------
    # Weight as (Cout, ks*ks*Cin_p): row ordering matches im2col
    # ((dy*ks+dx)*Cin_p + cin); padded input channels carry zero weights.
    w_p = jnp.pad(weight.astype(compute_dtype),
                  ((0, 0), (0, Cin_p - Cin), (0, 0), (0, 0)))
    w_flat = jnp.transpose(w_p, (0, 2, 3, 1)).reshape(Cout, K)
    # Fold conv bias + eval-mode BatchNorm into per-channel scale / shift.
    inv_std = jax.lax.rsqrt(running_var.astype(jnp.float32) + eps)
    scale = (gamma * inv_std).astype(jnp.float32).reshape(Cout, 1)
    shift = (beta + (bias - running_mean) * gamma * inv_std)
    shift = shift.astype(jnp.float32).reshape(Cout, 1)

    # --- Row-window extraction (single fused XLA pass over the input) -----
    # Flatten spatial, zero-pad by F on each side, cut windows of L elements
    # per row tile.  Window t holds exactly the rows (plus halo) needed by
    # output rows [t*Tr, (t+1)*Tr); vertical zero padding lands in the halo,
    # horizontal wrap-around is masked inside the kernel.
    x_c = jnp.pad(x.astype(compute_dtype), ((0, 0), (0, Cin_p - Cin),
                                            (0, 0), (0, 0)))
    xg = jnp.pad(x_c.reshape(B, Cin_p, HW), ((0, 0), (0, 0), (F, F)))
    x_win = jnp.stack([xg[:, :, t * TrW: t * TrW + L] for t in range(n_t)],
                      axis=1)                          # (B, n_t, Cin_p, L)

    kernel = _make_kernel(Cin_p, W, Tr, ks)

    cost = pl.CostEstimate(
        flops=2 * B * Cout * K * HW,
        transcendentals=B * Cout * HW,                 # exp inside GELU
        bytes_accessed=(x_win.size * c_bytes + w_flat.size * c_bytes
                        + B * Cout * HW * o_bytes + 2 * Cout * 4))

    if n_co == 1:
        # Grid-invariant weights -> single-buffered (saves VMEM).
        w_spec = pl.BlockSpec((Cout_t, K), lambda b, t, co: (co, 0),
                              pipeline_mode=pl.Buffered(1))
    else:
        w_spec = pl.BlockSpec((Cout_t, K), lambda b, t, co: (co, 0))

    y_flat = pl.pallas_call(
        kernel,
        out_shape=jax.ShapeDtypeStruct((B, Cout, HW), out_dtype),
        grid=(B, n_t, n_co),
        in_specs=[
            pl.BlockSpec((None, None, Cin_p, L), lambda b, t, co: (b, t, 0, 0)),
            w_spec,
            pl.BlockSpec((Cout_t, 1), lambda b, t, co: (co, 0)),
            pl.BlockSpec((Cout_t, 1), lambda b, t, co: (co, 0)),
        ],
        out_specs=pl.BlockSpec((None, Cout_t, TrW), lambda b, t, co: (b, co, t)),
        scratch_shapes=[pltpu.VMEM((K, TrW), compute_dtype)],
        compiler_params=pltpu.CompilerParams(
            dimension_semantics=("parallel", "parallel", "arbitrary"),
            vmem_limit_bytes=vmem_limit),
        cost_estimate=cost,
    )(x_win, w_flat, scale, shift)

    return y_flat.reshape(B, Cout, H, W)


def _reference(x, weight, bias, gamma, beta, mean, var, *, eps=1e-5):
    """Pure-JAX (XLA) reference: Conv2d + BatchNorm2d (eval) + exact GELU."""
    y = jax.lax.conv_general_dilated(
        x, weight, window_strides=(1, 1), padding="SAME",
        dimension_numbers=("NCHW", "OIHW", "NCHW"))
    y = y + bias[None, :, None, None]
    y = (y - mean[None, :, None, None]) * jax.lax.rsqrt(var[None, :, None, None] + eps)
    y = y * gamma[None, :, None, None] + beta[None, :, None, None]
    return 0.5 * y * (1.0 + jax.lax.erf(y * _INV_SQRT2))


def _make_inputs(key, B, Cin, Cout, H, W, ks):
    kx, kw, kb, kg, kbe, km, kv = jax.random.split(key, 7)
    x = jax.random.normal(kx, (B, Cin, H, W), dtype=jnp.float32)
    bound = 1.0 / ((Cin * ks * ks) ** 0.5)
    weight = jax.random.uniform(kw, (Cout, Cin, ks, ks), minval=-bound,
                                maxval=bound, dtype=jnp.float32)
    bias = jax.random.uniform(kb, (Cout,), minval=-bound, maxval=bound,
                              dtype=jnp.float32)
    gamma = jax.random.uniform(kg, (Cout,), minval=0.5, maxval=1.5, dtype=jnp.float32)
    beta = 0.1 * jax.random.normal(kbe, (Cout,), dtype=jnp.float32)
    mean = 0.1 * jax.random.normal(km, (Cout,), dtype=jnp.float32)
    var = jax.random.uniform(kv, (Cout,), minval=0.5, maxval=1.5, dtype=jnp.float32)
    return x, weight, bias, gamma, beta, mean, var


if __name__ == "__main__":
    key = jax.random.PRNGKey(0)
    cases = [
        # (B, Cin, Cout, H, W, ks, row_tile, cout_tile)
        (2, 4, 8, 16, 16, 3, None, None),   # auto tiling (single spatial tile)
        (1, 8, 16, 16, 16, 3, 8, 8),        # multi row-tile + multi Cout-tile
        (1, 4, 8, 16, 16, 5, 8, None),      # 5x5 kernel (pad=2 border masks)
    ]
    for i, (B, Cin, Cout, H, W, ks, rt, ct) in enumerate(cases):
        key, sub = jax.random.split(key)
        x, weight, bias, gamma, beta, mean, var = _make_inputs(
            sub, B, Cin, Cout, H, W, ks)
        out = aconv_forward(x, weight, bias, gamma, beta, mean, var,
                            row_tile=rt, cout_tile=ct)
        out = jax.block_until_ready(out)
        ref = _reference(x, weight, bias, gamma, beta, mean, var)
        assert out.shape == (B, Cout, H, W)
        out_f32 = out.astype(jnp.float32)
        max_err = float(jnp.max(jnp.abs(out_f32 - ref)))
        # bf16 matmul inputs with f32 accumulation -> a few e-3 absolute error.
        assert jnp.allclose(out_f32, ref, atol=3e-2, rtol=3e-2), \
            f"case {i}: mismatch vs reference, max abs err {max_err}"
    print("KERNEL_OK")
</pallas_src>

<mosaic_0001>
module attributes {stable_mosaic.version = 11 : i64} {
  func.func @kernel(%arg0: i32, %arg1: i32, %arg2: i32, %arg3: memref<1x1x16x290xbf16, #tpu.memory_space<vmem>>, %arg4: memref<8x144xbf16, #tpu.memory_space<vmem>>, %arg5: memref<8x1xf32, #tpu.memory_space<vmem>>, %arg6: memref<8x1xf32, #tpu.memory_space<vmem>>, %arg7: memref<1x8x256xf32, #tpu.memory_space<vmem>>, %arg8: memref<144x256xbf16, #tpu.memory_space<vmem>>) attributes {dimension_semantics = [#tpu.dimension_semantics<parallel>, #tpu.dimension_semantics<parallel>, #tpu.dimension_semantics<arbitrary>], iteration_bounds = array<i64: 2, 1, 1>, scalar_prefetch = 0 : i64, scratch_operands = 1 : i64, tpu.core_type = #tpu.core_type<tc>, window_params = [{transform_indices = @transform_0, window_bounds = array<i64: 1, 1, 16, 290>}, {pipeline_mode = #tpu.pipeline_mode<synchronous>, transform_indices = @transform_1, window_bounds = array<i64: 8, 144>}, {transform_indices = @transform_2, window_bounds = array<i64: 8, 1>}, {transform_indices = @transform_3, window_bounds = array<i64: 8, 1>}, {transform_indices = @transform_4, window_bounds = array<i64: 1, 8, 256>}]} {
    %c0_i32 = arith.constant 0 : i32
    %0 = arith.cmpi eq, %arg2, %c0_i32 : i32
    %1 = arith.extui %0 : i1 to i32
    %c0_i32_0 = arith.constant 0 : i32
    %2 = arith.cmpi ne, %1, %c0_i32_0 : i32
    scf.if %2 {
      %54 = tpu.iota {dimensions = array<i32: 1>} : vector<1x256xi32>
      %c16_i32 = arith.constant 16 : i32
      %c0_i32_25 = arith.constant 0 : i32
      %55 = arith.cmpi eq, %c16_i32, %c0_i32_25 : i32
      %c1_i32 = arith.constant 1 : i32
      %56 = arith.select %55, %c1_i32, %c16_i32 : i32
      %57 = vector.broadcast %56 : i32 to vector<1x256xi32>
      %58 = arith.remsi %54, %57 : vector<1x256xi32>
      %c0_i32_26 = arith.constant 0 : i32
      %59 = vector.broadcast %c0_i32_26 : i32 to vector<1x256xi32>
      %60 = arith.cmpi ne, %58, %59 : vector<1x256xi32>
      %c0_i32_27 = arith.constant 0 : i32
      %61 = vector.broadcast %c0_i32_27 : i32 to vector<1x256xi32>
      %62 = arith.cmpi slt, %58, %61 : vector<1x256xi32>
      %c0_i32_28 = arith.constant 0 : i32
      %63 = arith.cmpi slt, %56, %c0_i32_28 : i32
      %64 = vector.broadcast %63 : i1 to vector<1x256xi1>
      %65 = vector.broadcast %64 : vector<1x256xi1> to vector<1x256xi1>
      %66 = arith.xori %62, %65 : vector<1x256xi1>
      %67 = arith.andi %66, %60 : vector<1x256xi1>
      %68 = vector.broadcast %56 : i32 to vector<1x256xi32>
      %69 = arith.addi %58, %68 : vector<1x256xi32>
      %70 = arith.select %67, %69, %58 : vector<1x256xi1>, vector<1x256xi32>
      %c-1_i32 = arith.constant -1 : i32
      %71 = vector.broadcast %c-1_i32 : i32 to vector<1x256xi32>
      %72 = arith.addi %70, %71 : vector<1x256xi32>
      %c0_i32_29 = arith.constant 0 : i32
      %73 = vector.broadcast %c0_i32_29 : i32 to vector<1x256xi32>
      %74 = arith.cmpi sge, %72, %73 : vector<1x256xi32>
      %c-1_i32_30 = arith.constant -1 : i32
      %75 = vector.broadcast %c-1_i32_30 : i32 to vector<1x256xi32>
      %76 = arith.addi %70, %75 : vector<1x256xi32>
      %c16_i32_31 = arith.constant 16 : i32
      %77 = vector.broadcast %c16_i32_31 : i32 to vector<1x256xi32>
      %78 = arith.cmpi slt, %76, %77 : vector<1x256xi32>
      %79 = arith.andi %74, %78 : vector<1x256xi1>
      %c1_i32_32 = arith.constant 1 : i32
      %80 = vector.broadcast %c1_i32_32 : i32 to vector<1x256xi32>
      %81 = arith.addi %70, %80 : vector<1x256xi32>
      %c0_i32_33 = arith.constant 0 : i32
      %82 = vector.broadcast %c0_i32_33 : i32 to vector<1x256xi32>
      %83 = arith.cmpi sge, %81, %82 : vector<1x256xi32>
      %c1_i32_34 = arith.constant 1 : i32
      %84 = vector.broadcast %c1_i32_34 : i32 to vector<1x256xi32>
      %85 = arith.addi %70, %84 : vector<1x256xi32>
      %c16_i32_35 = arith.constant 16 : i32
      %86 = vector.broadcast %c16_i32_35 : i32 to vector<1x256xi32>
      %87 = arith.cmpi slt, %85, %86 : vector<1x256xi32>
      %88 = arith.andi %83, %87 : vector<1x256xi1>
      %c0_36 = arith.constant 0 : index
      %c0_37 = arith.constant 0 : index
      %c0_38 = arith.constant 0 : index
      %c0_39 = arith.constant 0 : index
      %89 = vector.load %arg3[%c0_36, %c0_37, %c0_38, %c0_39] : memref<1x1x16x290xbf16, #tpu.memory_space<vmem>>, vector<1x1x16x256xbf16>
      %90 = vector.shape_cast %89 : vector<1x1x16x256xbf16> to vector<16x256xbf16>
      %cst_40 = arith.constant 0.000000e+00 : bf16
      %91 = vector.broadcast %cst_40 : bf16 to vector<16x256xbf16>
      %92 = vector.shape_cast %79 : vector<1x256xi1> to vector<1x256xi1>
      %93 = vector.broadcast %92 : vector<1x256xi1> to vector<16x256xi1>
      %94 = arith.select %93, %90, %91 : vector<16x256xi1>, vector<16x256xbf16>
      %c0_41 = arith.constant 0 : index
      %c0_42 = arith.constant 0 : index
      %95 = vector.load %arg8[%c0_41, %c0_42] : memref<144x256xbf16, #tpu.memory_space<vmem>>, vector<16x256xbf16>
      tpu.vector_store %arg8[%c0_41, %c0_42], %94 {strides = array<i32>} : memref<144x256xbf16, #tpu.memory_space<vmem>>, vector<16x256xbf16>,
      %c0_43 = arith.constant 0 : index
      %c0_44 = arith.constant 0 : index
      %c0_45 = arith.constant 0 : index
      %c1 = arith.constant 1 : index
      %96 = vector.load %arg3[%c0_43, %c0_44, %c0_45, %c1] : memref<1x1x16x290xbf16, #tpu.memory_space<vmem>>, vector<1x1x16x256xbf16>
      %97 = vector.shape_cast %96 : vector<1x1x16x256xbf16> to vector<16x256xbf16>
      %c16 = arith.constant 16 : index
      %c0_46 = arith.constant 0 : index
      %98 = vector.load %arg8[%c16, %c0_46] : memref<144x256xbf16, #tpu.memory_space<vmem>>, vector<16x256xbf16>
      tpu.vector_store %arg8[%c16, %c0_46], %97 {strides = array<i32>} : memref<144x256xbf16, #tpu.memory_space<vmem>>, vector<16x256xbf16>,
      %c0_47 = arith.constant 0 : index
      %c0_48 = arith.constant 0 : index
      %c0_49 = arith.constant 0 : index
      %c2 = arith.constant 2 : index
      %99 = vector.load %arg3[%c0_47, %c0_48, %c0_49, %c2] : memref<1x1x16x290xbf16, #tpu.memory_space<vmem>>, vector<1x1x16x256xbf16>
      %100 = vector.shape_cast %99 : vector<1x1x16x256xbf16> to vector<16x256xbf16>
      %cst_50 = arith.constant 0.000000e+00 : bf16
      %101 = vector.broadcast %cst_50 : bf16 to vector<16x256xbf16>
      %102 = vector.shape_cast %88 : vector<1x256xi1> to vector<1x256xi1>
      %103 = vector.broadcast %102 : vector<1x256xi1> to vector<16x256xi1>
      %104 = arith.select %103, %100, %101 : vector<16x256xi1>, vector<16x256xbf16>
      %c32 = arith.constant 32 : index
      %c0_51 = arith.constant 0 : index
      %105 = vector.load %arg8[%c32, %c0_51] : memref<144x256xbf16, #tpu.memory_space<vmem>>, vector<16x256xbf16>
      tpu.vector_store %arg8[%c32, %c0_51], %104 {strides = array<i32>} : memref<144x256xbf16, #tpu.memory_space<vmem>>, vector<16x256xbf16>,
      %c0_52 = arith.constant 0 : index
      %c0_53 = arith.constant 0 : index
      %c0_54 = arith.constant 0 : index
      %c16_55 = arith.constant 16 : index
      %106 = vector.load %arg3[%c0_52, %c0_53, %c0_54, %c16_55] : memref<1x1x16x290xbf16, #tpu.memory_space<vmem>>, vector<1x1x16x256xbf16>
      %107 = vector.shape_cast %106 : vector<1x1x16x256xbf16> to vector<16x256xbf16>
      %cst_56 = arith.constant 0.000000e+00 : bf16
      %108 = vector.broadcast %cst_56 : bf16 to vector<16x256xbf16>
      %109 = vector.shape_cast %79 : vector<1x256xi1> to vector<1x256xi1>
      %110 = vector.broadcast %109 : vector<1x256xi1> to vector<16x256xi1>
      %111 = arith.select %110, %107, %108 : vector<16x256xi1>, vector<16x256xbf16>
      %c48 = arith.constant 48 : index
      %c0_57 = arith.constant 0 : index
      %112 = vector.load %arg8[%c48, %c0_57] : memref<144x256xbf16, #tpu.memory_space<vmem>>, vector<16x256xbf16>
      tpu.vector_store %arg8[%c48, %c0_57], %111 {strides = array<i32>} : memref<144x256xbf16, #tpu.memory_space<vmem>>, vector<16x256xbf16>,
      %c0_58 = arith.constant 0 : index
      %c0_59 = arith.constant 0 : index
      %c0_60 = arith.constant 0 : index
      %c17 = arith.constant 17 : index
      %113 = vector.load %arg3[%c0_58, %c0_59, %c0_60, %c17] : memref<1x1x16x290xbf16, #tpu.memory_space<vmem>>, vector<1x1x16x256xbf16>
      %114 = vector.shape_cast %113 : vector<1x1x16x256xbf16> to vector<16x256xbf16>
      %c64 = arith.constant 64 : index
      %c0_61 = arith.constant 0 : index
      %115 = vector.load %arg8[%c64, %c0_61] : memref<144x256xbf16, #tpu.memory_space<vmem>>, vector<16x256xbf16>
      tpu.vector_store %arg8[%c64, %c0_61], %114 {strides = array<i32>} : memref<144x256xbf16, #tpu.memory_space<vmem>>, vector<16x256xbf16>,
      %c0_62 = arith.constant 0 : index
      %c0_63 = arith.constant 0 : index
      %c0_64 = arith.constant 0 : index
      %c18 = arith.constant 18 : index
      %116 = vector.load %arg3[%c0_62, %c0_63, %c0_64, %c18] : memref<1x1x16x290xbf16, #tpu.memory_space<vmem>>, vector<1x1x16x256xbf16>
      %117 = vector.shape_cast %116 : vector<1x1x16x256xbf16> to vector<16x256xbf16>
      %cst_65 = arith.constant 0.000000e+00 : bf16
      %118 = vector.broadcast %cst_65 : bf16 to vector<16x256xbf16>
      %119 = vector.shape_cast %88 : vector<1x256xi1> to vector<1x256xi1>
      %120 = vector.broadcast %119 : vector<1x256xi1> to vector<16x256xi1>
      %121 = arith.select %120, %117, %118 : vector<16x256xi1>, vector<16x256xbf16>
      %c80 = arith.constant 80 : index
      %c0_66 = arith.constant 0 : index
      %122 = vector.load %arg8[%c80, %c0_66] : memref<144x256xbf16, #tpu.memory_space<vmem>>, vector<16x256xbf16>
      tpu.vector_store %arg8[%c80, %c0_66], %121 {strides = array<i32>} : memref<144x256xbf16, #tpu.memory_space<vmem>>, vector<16x256xbf16>,
      %c0_67 = arith.constant 0 : index
      %c0_68 = arith.constant 0 : index
      %c0_69 = arith.constant 0 : index
      %c32_70 = arith.constant 32 : index
      %123 = vector.load %arg3[%c0_67, %c0_68, %c0_69, %c32_70] : memref<1x1x16x290xbf16, #tpu.memory_space<vmem>>, vector<1x1x16x256xbf16>
      %124 = vector.shape_cast %123 : vector<1x1x16x256xbf16> to vector<16x256xbf16>
      %cst_71 = arith.constant 0.000000e+00 : bf16
      %125 = vector.broadcast %cst_71 : bf16 to vector<16x256xbf16>
      %126 = vector.shape_cast %79 : vector<1x256xi1> to vector<1x256xi1>
      %127 = vector.broadcast %126 : vector<1x256xi1> to vector<16x256xi1>
      %128 = arith.select %127, %124, %125 : vector<16x256xi1>, vector<16x256xbf16>
      %c96 = arith.constant 96 : index
      %c0_72 = arith.constant 0 : index
      %129 = vector.load %arg8[%c96, %c0_72] : memref<144x256xbf16, #tpu.memory_space<vmem>>, vector<16x256xbf16>
      tpu.vector_store %arg8[%c96, %c0_72], %128 {strides = array<i32>} : memref<144x256xbf16, #tpu.memory_space<vmem>>, vector<16x256xbf16>,
      %c0_73 = arith.constant 0 : index
      %c0_74 = arith.constant 0 : index
      %c0_75 = arith.constant 0 : index
      %c33 = arith.constant 33 : index
      %130 = vector.load %arg3[%c0_73, %c0_74, %c0_75, %c33] : memref<1x1x16x290xbf16, #tpu.memory_space<vmem>>, vector<1x1x16x256xbf16>
      %131 = vector.shape_cast %130 : vector<1x1x16x256xbf16> to vector<16x256xbf16>
      %c112 = arith.constant 112 : index
      %c0_76 = arith.constant 0 : index
      %132 = vector.load %arg8[%c112, %c0_76] : memref<144x256xbf16, #tpu.memory_space<vmem>>, vector<16x256xbf16>
      tpu.vector_store %arg8[%c112, %c0_76], %131 {strides = array<i32>} : memref<144x256xbf16, #tpu.memory_space<vmem>>, vector<16x256xbf16>,
      %c0_77 = arith.constant 0 : index
      %c0_78 = arith.constant 0 : index
      %c0_79 = arith.constant 0 : index
      %c34 = arith.constant 34 : index
      %133 = vector.load %arg3[%c0_77, %c0_78, %c0_79, %c34] : memref<1x1x16x290xbf16, #tpu.memory_space<vmem>>, vector<1x1x16x256xbf16>
      %134 = vector.shape_cast %133 : vector<1x1x16x256xbf16> to vector<16x256xbf16>
      %cst_80 = arith.constant 0.000000e+00 : bf16
      %135 = vector.broadcast %cst_80 : bf16 to vector<16x256xbf16>
      %136 = vector.shape_cast %88 : vector<1x256xi1> to vector<1x256xi1>
      %137 = vector.broadcast %136 : vector<1x256xi1> to vector<16x256xi1>
      %138 = arith.select %137, %134, %135 : vector<16x256xi1>, vector<16x256xbf16>
      %c128 = arith.constant 128 : index
      %c0_81 = arith.constant 0 : index
      %139 = vector.load %arg8[%c128, %c0_81] : memref<144x256xbf16, #tpu.memory_space<vmem>>, vector<16x256xbf16>
      tpu.vector_store %arg8[%c128, %c0_81], %138 {strides = array<i32>} : memref<144x256xbf16, #tpu.memory_space<vmem>>, vector<16x256xbf16>,
    } else {
    }
    %c0 = arith.constant 0 : index
    %c0_1 = arith.constant 0 : index
    %3 = vector.load %arg4[%c0, %c0_1] : memref<8x144xbf16, #tpu.memory_space<vmem>>, vector<8x144xbf16>
    %c0_2 = arith.constant 0 : index
    %c0_3 = arith.constant 0 : index
    %4 = vector.load %arg8[%c0_2, %c0_3] : memref<144x256xbf16, #tpu.memory_space<vmem>>, vector<144x256xbf16>
    %cst = arith.constant dense<0.000000e+00> : vector<8x256xf32>
    %5 = tpu.matmul %3, %4, %cst {dimension_numbers = #tpu.dot_dimension_numbers<[1], [0], [0], [1], [0, 0, 1, 1], [], []>} : vector<8x144xbf16>, vector<144x256xbf16>, vector<8x256xf32> -> vector<8x256xf32>
    %c0_4 = arith.constant 0 : index
    %c0_5 = arith.constant 0 : index
    %6 = vector.load %arg5[%c0_4, %c0_5] : memref<8x1xf32, #tpu.memory_space<vmem>>, vector<8x1xf32>
    %7 = vector.broadcast %6 : vector<8x1xf32> to vector<8x256xf32>
    %8 = arith.mulf %5, %7 : vector<8x256xf32>
    %c0_6 = arith.constant 0 : index
    %c0_7 = arith.constant 0 : index
    %9 = vector.load %arg6[%c0_6, %c0_7] : memref<8x1xf32, #tpu.memory_space<vmem>>, vector<8x1xf32>
    %10 = vector.broadcast %9 : vector<8x1xf32> to vector<8x256xf32>
    %11 = arith.addf %8, %10 : vector<8x256xf32>
    %cst_8 = arith.constant 0.707106769 : f32
    %12 = vector.broadcast %cst_8 : f32 to vector<8x256xf32>
    %13 = arith.mulf %11, %12 : vector<8x256xf32>
    %14 = math.absf %13 : vector<8x256xf32>
    %cst_9 = arith.constant 0.327591091 : f32
    %15 = vector.broadcast %cst_9 : f32 to vector<8x256xf32>
    %16 = arith.mulf %15, %14 : vector<8x256xf32>
    %cst_10 = arith.constant 1.000000e+00 : f32
    %17 = vector.broadcast %cst_10 : f32 to vector<8x256xf32>
    %18 = arith.addf %17, %16 : vector<8x256xf32>
    %19 = tpu.reciprocal %18 {approx = true} : vector<8x256xf32> -> vector<8x256xf32>
    %cst_11 = arith.constant 1.06140542 : f32
    %20 = vector.broadcast %cst_11 : f32 to vector<8x256xf32>
    %21 = arith.mulf %19, %20 : vector<8x256xf32>
    %cst_12 = arith.constant -1.45315206 : f32
    %22 = vector.broadcast %cst_12 : f32 to vector<8x256xf32>
    %23 = arith.addf %22, %21 : vector<8x256xf32>
    %24 = arith.mulf %19, %23 : vector<8x256xf32>
    %cst_13 = arith.constant 1.42141378 : f32
    %25 = vector.broadcast %cst_13 : f32 to vector<8x256xf32>
    %26 = arith.addf %25, %24 : vector<8x256xf32>
    %27 = arith.mulf %19, %26 : vector<8x256xf32>
    %cst_14 = arith.constant -0.284496725 : f32
    %28 = vector.broadcast %cst_14 : f32 to vector<8x256xf32>
    %29 = arith.addf %28, %27 : vector<8x256xf32>
    %30 = arith.mulf %19, %29 : vector<8x256xf32>
    %cst_15 = arith.constant 0.254829586 : f32
    %31 = vector.broadcast %cst_15 : f32 to vector<8x256xf32>
    %32 = arith.addf %31, %30 : vector<8x256xf32>
    %33 = arith.mulf %19, %32 : vector<8x256xf32>
    %cst_16 = arith.constant 0.000000e+00 : f32
    %34 = vector.broadcast %cst_16 : f32 to vector<8x256xf32>
    %35 = arith.subf %34, %14 : vector<8x256xf32>
    %36 = arith.mulf %35, %14 : vector<8x256xf32>
    %37 = math.exp %36 : vector<8x256xf32>
    %38 = arith.mulf %33, %37 : vector<8x256xf32>
    %cst_17 = arith.constant 1.000000e+00 : f32
    %39 = vector.broadcast %cst_17 : f32 to vector<8x256xf32>
    %40 = arith.subf %39, %38 : vector<8x256xf32>
    %cst_18 = arith.constant 0.000000e+00 : f32
    %41 = vector.broadcast %cst_18 : f32 to vector<8x256xf32>
    %42 = arith.cmpf oge, %13, %41 : vector<8x256xf32>
    %cst_19 = arith.constant 0.000000e+00 : f32
    %43 = vector.broadcast %cst_19 : f32 to vector<8x256xf32>
    %44 = arith.subf %43, %40 : vector<8x256xf32>
    %45 = arith.select %42, %40, %44 : vector<8x256xi1>, vector<8x256xf32>
    %cst_20 = arith.constant 5.000000e-01 : f32
    %46 = vector.broadcast %cst_20 : f32 to vector<8x256xf32>
    %47 = arith.mulf %46, %11 : vector<8x256xf32>
    %cst_21 = arith.constant 1.000000e+00 : f32
    %48 = vector.broadcast %cst_21 : f32 to vector<8x256xf32>
    %49 = arith.addf %48, %45 : vector<8x256xf32>
    %50 = arith.mulf %47, %49 : vector<8x256xf32>
    %c0_22 = arith.constant 0 : index
    %c0_23 = arith.constant 0 : index
    %c0_24 = arith.constant 0 : index
    %51 = vector.load %arg7[%c0_22, %c0_23, %c0_24] : memref<1x8x256xf32, #tpu.memory_space<vmem>>, vector<1x8x256xf32>
    %52 = vector.shape_cast %51 : vector<1x8x256xf32> to vector<8x256xf32>
    %53 = vector.shape_cast %50 : vector<8x256xf32> to vector<1x8x256xf32>
    tpu.vector_store %arg7[%c0_22, %c0_23, %c0_24], %53 {strides = array<i32>} : memref<1x8x256xf32, #tpu.memory_space<vmem>>, vector<1x8x256xf32>,
    return
  }
  func.func @transform_0(%arg0: i32, %arg1: i32, %arg2: i32) -> (i32, i32, i32, i32) {
    %c0_i32 = arith.constant 0 : i32
    %c0_i32_0 = arith.constant 0 : i32
    %c0_i32_1 = arith.constant 0 : i32
    return %arg0, %arg1, %c0_i32, %c0_i32_0 : i32, i32, i32, i32
  }
  func.func @transform_1(%arg0: i32, %arg1: i32, %arg2: i32) -> (i32, i32) {
    %c0_i32 = arith.constant 0 : i32
    %c0_i32_0 = arith.constant 0 : i32
    return %arg2, %c0_i32 : i32, i32
  }
  func.func @transform_2(%arg0: i32, %arg1: i32, %arg2: i32) -> (i32, i32) {
    %c0_i32 = arith.constant 0 : i32
    %c0_i32_0 = arith.constant 0 : i32
    return %arg2, %c0_i32 : i32, i32
  }
  func.func @transform_3(%arg0: i32, %arg1: i32, %arg2: i32) -> (i32, i32) {
    %c0_i32 = arith.constant 0 : i32
    %c0_i32_0 = arith.constant 0 : i32
    return %arg2, %c0_i32 : i32, i32
  }
  func.func @transform_4(%arg0: i32, %arg1: i32, %arg2: i32) -> (i32, i32, i32) {
    %c0_i32 = arith.constant 0 : i32
    return %arg0, %arg2, %arg1 : i32, i32, i32
  }
}

</mosaic_0001>

<bundles_post_ra>
// kernel: tpu_custom_call.1
= control target key start
LH: loop header
LB: loop body
LE: loop exit
PB: predicated region body
PF: predicated region fallthrough
CT: control target
= control target key end

     0   :  { %9 = vsyncpa [#allocation4], 0  ;;  %s1595_s0 = inlined_call_operand.hbm [shape: bf16[2,1,16,290], index: 0, kind: input, shape index: {}]   ;;  %s1596_s1 = inlined_call_operand.vmem [shape: bf16[8,144], index: 1, kind: input, shape index: {}]   ;;  %s1597_s2 = inlined_call_operand.vmem [shape: f32[8,1], index: 2, kind: input, shape index: {}]   ;;  %s1598_s3 = inlined_call_operand.vmem [shape: f32[8,1], index: 3, kind: input, shape index: {}]   ;;  %s1599_s4 = inlined_call_operand.hbm [shape: f32[2,8,256], index: 4, kind: output, shape index: {}]  }
   0x1   :  { %11 = vsyncpa [#allocation4 + $0x1], 0 }
   0x2   :  { %12 = vsyncpa [#allocation5], 0 }
   0x3   :  { %14 = vsyncpa [#allocation5 + $0x1], 0  ;;  %s1320_s15 = smov 0   ;;  %s1322_s16 = smov 0  }
   0x4   :  { %s1324_s17 = smov 0   ;;  %s1326_s18 = smov 0  }
   0x5   :  { %s1328_s19 = smov 0   ;;  %s1330_s20 = smov 0  }
   0x6 LB: > { %s1037_s21 = sadd.s32 4294967295, %s1275_s20   ;;  %s1038_s22 = sadd.s32 4294967294, %s1275_s20   ;;  %s1275_s20 = sphi %s1330_s20, %s20_s20   ;;  %s1271_s19 = sphi %s1328_s19, %s1620_s19   ;;  %s1267_s18 = sphi %s1326_s18, %s1619_s18   ;;  %s1263_s17 = sphi %s1324_s17, %s1618_s17   ;;  %s1259_s16 = sphi %s1322_s16, %s1617_s16   ;;  %s1255_s15 = sphi %s1320_s15, %s1616_s15  }
   0x7   : > { %s39_s23 = sadd.s32 1, %s1271_s19  ;;  %s48_s24 = sadd.s32 1, %s1263_s17 }
   0x8   : > { %p41_p0 = scmp.ge.s32.totalorder %s39_s23, 2  ;;  %p55_p1 = scmp.ne.s32.totalorder %s1263_s17, %s1259_s16 }
   0x9   : > { %p56_p2 = scmp.eq.s32.totalorder %s1275_s20, 0  ;;  %p61_p3 = scmp.ne.s32.totalorder %s1259_s16, %s1255_s15 }
   0xa   : > { %s1622_s23 = smov (%p41_p0, %s39_s23), 0  ;;  %p62_p5 = scmp.eq.s32.totalorder %s1037_s21, 0 }
   0xb   : > { %p1361_p4 = por %p56_p2, %p55_p1  ;;  %s43_s26 = ssub.s32 %s1271_s19, %s1622_s23 }
   0xc   : > { %p167_p6 = scmp.eq.s32.totalorder %s1037_s21, 1  ;;  %p46_p7 = scmp.eq.s32.totalorder %s43_s26, 0 }
   0xd   : > { %p1367_p8 = por %p62_p5, %p61_p3  ;;  %p173_p10 = scmp.eq.s32.totalorder %s1038_s22, 1 }
   0xe   : > { %p1371_p9 = por %p167_p6, %p55_p1  ;;  %p1089_p13 = scmp.lt.s32.totalorder %s1275_s20, 2 }
   0xf   : > { %s1376_s29 = scalar_select %p46_p7, %s1263_s17, %s48_s24  }
  0x10   : > { %p1378_p11 = por %p173_p10, %p61_p3  ;;  %s215_s5 = sand.u32 1, %s1263_s17  }
  0x11   : > { %s1074_s6 = smul.u32 24, %s215_s5  ;;  %p1388_p0 = pnand %p1089_p13, %p1361_p4 }
  0x12   : > { %s1075_s7 = smul.u32 384, %s1271_s19  ;;  %p1045_p1 = scmp.ge.s32.totalorder %s1275_s20, 1 }
  0x13   : > { %s219_s12 = scalar_lea.vmem [#allocation3], %s1074_s6  ;;  %s216_s14 = scalar_lea.sflag [#allocation4], %s215_s5 }
  0x14   : > { %s227_s11 = scalar_lea.hbm %s1595_s0, %s1075_s7  ;;  %s228_s13 = sshll.u32 %s219_s12, 4  ;;  %s229_s13 = int_to_ptr.vmem [resolvable:$true] %s228_s13 }
  0x15   : > { %p1169_p2 = pneg %p1388_p0  ;;  %s1180_s21 = scalar_lea.vmem %s229_s13, 384 }
  0x16   : > { %p1181_p3 = scmp.ne.s32.totalorder %s229_s13, %s1180_s21  ;;  %s1277_s22 = smov [#allocation3]  }
  0x17   : > { %s1185_s24 = sshll.u32 %s1277_s22, 4  ;;  %s1186_s24 = int_to_ptr.vmem [resolvable:$false] %s1185_s24 }
  0x18   : > { %p1183_p5 = pnand %p1181_p3, %p1169_p2  ;;  %s1187_s25 = scalar_lea.vmem %s1186_s24, 768 }
  0x19   : > { %p1188_p4 = scmp.lt.s32.totalorder %s229_s13, %s1186_s24  ;;  %p1189_p7 = scmp.lt.s32.totalorder %s1187_s25, %s1180_s21 }
  0x1a   : > { %p1184_p6 = pneg %p1183_p5 }
  0x1b   : > { %p1190_p10 = por %p1189_p7, %p1188_p4 }
  0x1d   : > { %p1191_p13 = pnand %p1190_p10, %p1184_p6 }
  0x1f   : > { %1194 = shalt.err (!%p1191_p13)
}
  0x20   : > { %s1278_s26 = smov 192   ;;  %s1279_s5 = smov 12  }
  0x21   : > { %1084 = dma.hbm_to_vmem [thread:$0]  (!%p1388_p0), %s227_s11, 384, %s229_s13, %s216_s14, %s1278_s26, %s1278_s26, %s1279_s5  }
  0x22   : > { %p236_p12 = scmp.lt.s32.totalorder %s1275_s20, 3 }
  0x24   : > { %p237_p2 = pnand %p1045_p1, %p236_p12 }
  0x25   : > { %s1404_s6 = sand.u32 (!%p237_p2), 1, %s1259_s16  }
  0x26   : > { %240 = sbr.rel (%p237_p2) target bundleno = 604 (0x25c), region = 36  ;;  %s243_s9 = scalar_lea.sflag (!%p237_p2), [#allocation4], %s1404_s6 }
  0x27   : > { %s1076_s7 = smul.u32 (!%p237_p2), 24, %s1404_s6 }
  0x29   : > { %s1408_s10 = scalar_lea.vmem (!%p237_p2), [#allocation3], %s1076_s7 }
  0x2b   : > { %v305_v0 = vlaneseq }
  0x2c   : > { %1246 = dma.done.wait (%p1367_p8), %s243_s9, 384  }
  0x2d   : > { %1248 = vsyncadd (%p1367_p8), %s243_s9, 4294966912  ;;  %v1280_v1 = vmov 0   ;;  %v306_v2 = vand.u32 127, %v305_v0  ;;  %s1281_s27 = smov 32   ;;  %s1282_s8 = smov 16   ;;  %v1421_v13 = vld [vmem:[%s1408_s10] sm:$0xff] }
  0x2e   : > { %1155 = vset.pattern.permute.xlu1 %v1280_v1  ;;  %1156 = vset.pattern.permute.xlu0 %v1280_v1  ;;  %s1283_s11 = smov 18   ;;  %s1284_s12 = smov 2   ;;  %v586_v14 = vld [vmem:[%s1408_s10 + $0x8] sm:$0xf]  ;;  %v1426_v15 = vld [vmem:[%s1408_s10 + $0xc] sm:$0xff]  ;;  %vm552_vm6 = vcmask 261120  }
  0x2f   : > { %v307_v3 = vadd.s32 128, %v306_v2  ;;  %v312_v4 = vand.u32 15, %v306_v2  ;;  %s1285_s13 = smov 34   ;;  %s1286_s14 = smov 95   ;;  %v588_v16 = vld [vmem:[%s1408_s10 + $0x14] sm:$0xf] }
  0x30   : > { %s1287_s21 = smov 111   ;;  %v477_v17 = vld [vmem:[%s1408_s10 + $0x8] sm:$0xf]  ;;  %v479_v18 = vld [vmem:[%s1408_s10 + $0x14] sm:$0xf]  ;;  %s1288_s22 = smov 127  }
  0x31   : > { %v319_v5 = vand.u32 15, %v307_v3  ;;  %v332_v6 = vadd.s32 4294967295, %v312_v4  ;;  %v340_v7 = vadd.s32 1, %v312_v4  ;;  %v360_v19 = vld [vmem:[%s1408_s10 + $0x8] sm:$0xf]  ;;  %vm512_vm9 = vcmask 146432  }
  0x32   : > { %v546_v23 = vld [vmem:[%s1408_s10 + $0x8] sm:$0xf]  ;;  %s1289_s24 = smov 96   ;;  %v548_v31 = vld [vmem:[%s1408_s10 + $0x14] sm:$0xf]  ;;  %vm443_vm12 = vcmask 130048  }
  0x33   : > { %v333_v8 = vadd.s32 4294967295, %v319_v5  ;;  %vm334_vm0 = vcmp.ge.s32.totalorder %v332_v6, 0  ;;  %v341_v9 = vadd.s32 1, %v319_v5  ;;  %vm344_vm1 = vcmp.lt.s32.totalorder %v340_v7, 16  ;;  %v506_v33 = vld [vmem:[%s1408_s10 + $0x8] sm:$0xf] }
  0x34   : > { %vm379_vm13 = vcmask 1043456   ;;  %s1290_s25 = smov 110   ;;  %v508_v45 = vld [vmem:[%s1408_s10 + $0x14] sm:$0xf]  ;;  %vm606_vm14 = vcmask 777216   ;;  %s1291_s26 = smov 112  }
  0x35   : > { %vm335_vm2 = vcmp.ge.s32.totalorder %v333_v8, 0  ;;  %vm345_vm3 = vcmp.lt.s32.totalorder %v341_v9, 16  ;;  %v436_v48 = vld [vmem:[%s1408_s10 + $0x8] sm:$0xf]  ;;  %v438_v62 = vld [vmem:[%s1408_s10 + $0x14] sm:$0xf] }
  0x36   : > { %vm1414_vm4 = vmpackc.low %vm335_vm2, %vm334_vm0  ;;  %v390_v2 = vld [vmem:[%s1408_s10 + $0x8] sm:$0xf]  ;;  %s1292_s5 = smov 126   ;;  %v392_v8 = vld [vmem:[%s1408_s10 + $0x14] sm:$0xf]  ;;  %s1294_s9 = smov [#allocation6]  }
  0x37   : > { %v439_v11 = vsel %vm1414_vm4, 65537, %v1280_v1  ;;  %vm397_vm5 = vmpackc.low %vm345_vm3, %vm344_vm1  ;;  %vm402_vm1 = vcmask 15360   ;;  %v822_v25 = vld [vmem:[%s1598_s3] sm:$0xff] }
  0x38   : > { %549 = vrot.lane.b32.xlu0 %v439_v11, %s1281_s27  ;;  %440 = vrot.lane.b32.xlu1 %v439_v11, %s1282_s8  ;;  %v398_v12 = vsel %vm397_vm5, 65537, %v1280_v1  ;;  %vm621_vm5 = vcmask 277504   ;;  %s1293_s27 = smov 94  }
  0x3c   : > { %509 = vrot.lane.b32.xlu0 %v398_v12, %s1283_s11  ;;  %399 = vrot.lane.b32.xlu1 %v398_v12, %s1284_s12 }
  0x40   : > { %618 = vrot.lane.b32.xlu0 %v398_v12, %s1285_s13  ;;  %593 = vrot.lane.b32.xlu1 %v1421_v13, %s1286_s14 }
  0x44   : > { %595 = vrot.lane.b32.xlu0 %v586_v14, %s1286_s14  ;;  %597 = vrot.lane.b32.xlu1 %v1426_v15, %s1286_s14  ;;  %v362_v14 = vld [vmem:[%s1408_s10 + $0x14] sm:$0xf] }
  0x48   : > { %599 = vrot.lane.b32.xlu0 %v588_v16, %s1286_s14  ;;  %484 = vrot.lane.b32.xlu1 %v1421_v13, %s1287_s21  ;;  %s1073_s14 = sshll.u32 %s1267_s18, 8  ;;  %s1199_s18 = sshll.u32 %s1294_s9, 4  ;;  %s1200_s18 = int_to_ptr.vmem [resolvable:$false] %s1199_s18 }
  0x4c   : > { %486 = vrot.lane.b32.xlu0 %v477_v17, %s1287_s21  ;;  %488 = vrot.lane.b32.xlu1 %v1426_v15, %s1287_s21  ;;  %v615_v17 = vld [vmem:[%s1408_s10 + $0x8] sm:$0xf] }
  0x50   : > { %490 = vrot.lane.b32.xlu0 %v479_v18, %s1287_s21  ;;  %367 = vrot.lane.b32.xlu1 %v1421_v13, %s1288_s22 }
  0x54   : > { %369 = vrot.lane.b32.xlu0 %v360_v19, %s1288_s22  ;;  %v1509_v19 = vld [vmem:[%s1596_s1] sm:$0xff] }
  0xaa   : > { %v550_v20 = vpop.permute.xlu0 %549  ;;  %v441_v21 = vpop.permute.xlu1 %440 }
  0xab   : > { %v551_v22 = vrot.slane %v550_v20, 4  ;;  %v442_v40 = vrot.slane %v441_v21, 4 }
  0xad   : > { %v553_v24 = vsel %vm552_vm6, %v551_v22, %v550_v20  ;;  %vm1439_vm7 = vcmp.ne.s16.totalorder %v551_v22, 0  ;;  %v444_v47 = vsel %vm443_vm12, %v442_v40, %v441_v21  ;;  %vm1466_vm15 = vcmp.ne.s16.totalorder %v442_v40, 0  ;;  %v617_v22 = vld [vmem:[%s1408_s10 + $0x14] sm:$0xf]  ;;  %s1046_s10 = sshll.u32 %s1404_s6, 4 }
  0xae   : > { %vm554_vm8 = vcmp.ne.s16.totalorder %v553_v24, 0  ;;  %v557_v26 = vsel %vm1439_vm7, %v546_v23, 0  ;;  %v510_v27 = vpop.permute.xlu0 %509  ;;  %v400_v28 = vpop.permute.xlu1 %399  ;;  %v559_v35 = vsel %vm1439_vm7, %v548_v31, 0  ;;  %vm445_vm0 = vcmp.ne.s16.totalorder %v444_v47, 0  ;;  %s283_s21 = scalar_lea.vmem [#allocation6], %s1046_s10 }
  0xaf   : > { %566 = vrot.lane.b32.xlu0 %v557_v26, %s1289_s24  ;;  %v511_v29 = vrot.slane %v510_v27, 4  ;;  %v556_v30 = vsel %vm554_vm8, %v1421_v13, 0  ;;  %v558_v38 = vsel %vm554_vm8, %v1426_v15, 0  ;;  %v448_v56 = vsel %vm1466_vm15, %v436_v48, 0  ;;  %v814_v26 = vld [vmem:[%s1597_s2] sm:$0xff] }
  0xb0   : > { %564 = vrot.lane.b32.xlu1 %v556_v30, %s1289_s24  ;;  %v401_v58 = vrot.slane %v400_v28, 4  ;;  %v447_v61 = vsel %vm445_vm0, %v1421_v13, 0  ;;  %v450_v4 = vsel %vm1466_vm15, %v438_v62, 0  ;;  %v449_v5 = vsel %vm445_vm0, %v1426_v15, 0 }
  0xb1   : > { %v513_v32 = vsel %vm512_vm9, %v511_v29, %v510_v27  ;;  %vm1449_vm10 = vcmp.ne.s16.totalorder %v511_v29, 0  ;;  %v1048_v20 = vcombine.high %v1509_v19, %v1509_v19  ;;  %vm577_vm8 = vcmask 785408  }
  0xb2   : > { %v1455_v36 = vpop.permute.xlu0 %618  ;;  %v594_v37 = vpop.permute.xlu1 %593  ;;  %vm514_vm11 = vcmp.ne.s16.totalorder %v513_v32, 0  ;;  %v517_v39 = vsel %vm1449_vm10, %v506_v33, 0  ;;  %v519_v52 = vsel %vm1449_vm10, %v508_v45, 0  ;;  %v403_v1 = vsel %vm402_vm1, %v401_v58, %v400_v28 }
  0xb3   : > { %570 = vrot.lane.b32.xlu0 %v559_v35, %s1289_s24  ;;  %v601_v41 = vrot.slane %v594_v37, 4  ;;  %v516_v44 = vsel %vm514_vm11, %v1421_v13, 0  ;;  %v518_v54 = vsel %vm514_vm11, %v1426_v15, 0  ;;  %vm1484_vm2 = vcmp.ne.s16.totalorder %v401_v58, 0  ;;  %1067 = vmatprep.mubr.msk.bf16.mxu0 %vm443_vm12, %v1048_v20 }
  0xb4   : > { %568 = vrot.lane.b32.xlu1 %v558_v38, %s1289_s24  ;;  %vm404_vm3 = vcmp.ne.s16.totalorder %v403_v1, 0  ;;  %v407_v6 = vsel %vm1484_vm2, %v390_v2, 0  ;;  %v620_v9 = vrot.slane %v1455_v36, 4  ;;  %v409_v11 = vsel %vm1484_vm2, %v392_v8, 0 }
  0xb5   : > { %v406_v7 = vsel %vm404_vm3, %v1421_v13, 0  ;;  %v408_v12 = vsel %vm404_vm3, %v1426_v15, 0  ;;  %vm497_vm9 = vcmask 908288   ;;  %vm537_vm10 = vcmask 900096  }
  0xb6   : > { %v596_v42 = vpop.permute.xlu0 %595  ;;  %v598_v43 = vpop.permute.xlu1 %597  ;;  %v622_v16 = vsel %vm621_vm5, %v620_v9, %v1455_v36  ;;  %vm624_vm6 = vcmp.ne.s16.totalorder %v620_v9, 0  ;;  %vm468_vm11 = vcmask 916480   ;;  %vm427_vm12 = vcmask 1031168  }
  0xb7   : > { %526 = vrot.lane.b32.xlu0 %v517_v39, %s1290_s25  ;;  %v602_v46 = vrot.slane %v596_v42, 4  ;;  %v603_v50 = vrot.slane %v598_v43, 4  ;;  %vm623_vm7 = vcmp.ne.s16.totalorder %v622_v16, 0  ;;  %v626_v18 = vsel %vm624_vm6, %v615_v17, 0 }
  0xb8   : > { %524 = vrot.lane.b32.xlu1 %v516_v44, %s1290_s25  ;;  %v625_v21 = vsel %vm623_vm7, %v1421_v13, 0  ;;  %v628_v23 = vsel %vm624_vm6, %v617_v22, 0  ;;  %v627_v24 = vsel %vm623_vm7, %v1426_v15, 0 }
  0xb9   : > { %v605_v51 = vsel %vm379_vm13, %v601_v41, %v602_v46 }
  0xba   : > { %v600_v53 = vpop.permute.xlu0 %599  ;;  %v607_v57 = vsel %vm606_vm14, %v594_v37, %v605_v51  ;;  %v485_v28 = vpop.permute.xlu1 %484 }
  0xbb   : > { %530 = vrot.lane.b32.xlu0 %v519_v52, %s1290_s25  ;;  %v604_v55 = vrot.slane %v600_v53, 4 }
  0xbc   : > { %528 = vrot.lane.b32.xlu1 %v518_v54, %s1290_s25 }
  0xbd   : > { %v608_v59 = vsel %vm379_vm13, %v603_v50, %v604_v55 }
  0xbe   : > { %v609_v60 = vsel %vm606_vm14, %v598_v43, %v608_v59  ;;  %v487_v27 = vpop.permute.xlu0 %486  ;;  %v489_v30 = vpop.permute.xlu1 %488  ;;  %v492_v43 = vrot.slane %v485_v28, 4  ;;  %vm381_vm14 = vcmask 1039360  }
  0xbf   : > { %457 = vrot.lane.b32.xlu0 %v448_v56, %s1291_s26  ;;  %v1064_v63 = vcombine.high %v607_v57, %v609_v60  ;;  %v1063_v0 = vcombine.low %v607_v57, %v609_v60  ;;  %v493_v42 = vrot.slane %v487_v27, 4  ;;  %v494_v47 = vrot.slane %v489_v30, 4 }
  0xc0   : > { %455 = vrot.lane.b32.xlu1 %v447_v61, %s1291_s26 }
  0xc1   : > { %773 = vmatprep.subr.bf16.mxu0 %v1064_v63  ;;  %v496_v58 = vsel %vm379_vm13, %v492_v43, %v493_v42 }
  0xc2   : > { %774 = vmatpush1.bf16.msra.mxu0 %v1063_v0  ;;  %v491_v29 = vpop.permute.xlu0 %490  ;;  %v1525_v32 = vpop.permute.xlu1 %367  ;;  %v498_v0 = vsel %vm497_vm9, %v485_v28, %v496_v58 }
  0xc3   : > { %461 = vrot.lane.b32.xlu0 %v450_v4, %s1291_s26  ;;  %v495_v46 = vrot.slane %v491_v29, 4 }
  0xc4   : > { %459 = vrot.lane.b32.xlu1 %v449_v5, %s1291_s26  ;;  %s901_s26 = scalar_lea.hbm %s1599_s4, %s1073_s14 }
  0xc5   : > { %v499_v59 = vsel %vm379_vm13, %v494_v47, %v495_v46 }
  0xc6   : > { %v1523_v31 = vpop.permute.xlu0 %369  ;;  %v500_v1 = vsel %vm497_vm9, %v489_v30, %v499_v59  ;;  %v375_v30 = vrot.slane %v1525_v32, 4 }
  0xc7   : > { %416 = vrot.lane.b32.xlu0 %v407_v6, %s1292_s5  ;;  %v1058_v9 = vcombine.high %v498_v0, %v500_v1  ;;  %v376_v29 = vrot.slane %v1523_v31, 4 }
  0xc8   : > { %414 = vrot.lane.b32.xlu1 %v406_v7, %s1292_s5 }
  0xcb   : > { %420 = vrot.lane.b32.xlu0 %v409_v11, %s1292_s5 }
  0xcc   : > { %418 = vrot.lane.b32.xlu1 %v408_v12, %s1292_s5  ;;  %s885_s5 = scalar_lea.sflag [#allocation5], %s1404_s6 }
  0xcf   : > { %373 = vrot.lane.b32.xlu0 %v362_v14, %s1288_s22 }
  0xd0   : > { %371 = vrot.lane.b32.xlu1 %v1426_v15, %s1288_s22  ;;  %s903_s22 = sshll.u32 %s283_s21, 4  ;;  %s904_s22 = int_to_ptr.vmem [resolvable:$true] %s903_s22 }
  0xd1   : > { %s1195_s7 = scalar_lea.vmem %s904_s22, 256  ;;  %p1202_p1 = scmp.lt.s32.totalorder %s904_s22, %s1200_s18 }
  0xd2   : > { %p1196_p8 = scmp.ne.s32.totalorder %s904_s22, %s1195_s7 }
  0xd3   : > { %635 = vrot.lane.b32.xlu0 %v626_v18, %s1293_s27  ;;  %v1057_v18 = vcombine.low %v498_v0, %v500_v1 }
  0xd4   : > { %633 = vrot.lane.b32.xlu1 %v625_v21, %s1293_s27  ;;  %p1197_p12 = pnand %p1196_p8, %p1371_p9 }
  0xd6   : > { %p1198_p0 = pneg %p1197_p12 }
  0xd7   : > { %639 = vrot.lane.b32.xlu0 %v628_v23, %s1293_s27 }
  0xd8   : > { %637 = vrot.lane.b32.xlu1 %v627_v24, %s1293_s27  ;;  %s1201_s27 = scalar_lea.vmem %s1200_s18, 512 }
  0xd9   : > { %p1203_p3 = scmp.lt.s32.totalorder %s1201_s27, %s1195_s7 }
  0xdb   : > { %825 = vperm.xlu0 %1156, %v822_v25   ;;  %p1204_p5 = por %p1203_p3, %p1202_p1 }
  0xdc   : > { %817 = vperm.xlu1 %1155, %v814_v26  }
  0xdd   : > { %p1205_p6 = pnand %p1204_p5, %p1198_p0 }
 0x121   : > { %v567_v33 = vpop.permute.xlu0 %566 }
 0x122   : > { %v565_v34 = vpop.permute.xlu1 %564  ;;  %v573_v35 = vrot.slane %v567_v33, 4 }
 0x123   : > { %v572_v36 = vrot.slane %v565_v34, 4 }
 0x125   : > { %v571_v37 = vpop.permute.xlu0 %570  ;;  %v576_v40 = vsel %vm379_vm13, %v572_v36, %v573_v35 }
 0x126   : > { %v575_v38 = vrot.slane %v571_v37, 4  ;;  %v569_v39 = vpop.permute.xlu1 %568  ;;  %v578_v48 = vsel %vm577_vm8, %v565_v34, %v576_v40 }
 0x127   : > { %v574_v41 = vrot.slane %v569_v39, 4 }
 0x129   : > { %v579_v44 = vsel %vm379_vm13, %v574_v41, %v575_v38  ;;  %v527_v45 = vpop.permute.xlu0 %526  ;;  %v380_v38 = vsel %vm379_vm13, %v375_v30, %v376_v29 }
 0x12a   : > { %v580_v49 = vsel %vm577_vm8, %v569_v39, %v579_v44  ;;  %v525_v50 = vpop.permute.xlu1 %524  ;;  %v533_v53 = vrot.slane %v527_v45, 4  ;;  %v355_v44 = vsel %vm1414_vm4, %v1421_v13, 0 }
 0x12b   : > { %v1061_v51 = vcombine.low %v578_v48, %v580_v49  ;;  %v1062_v52 = vcombine.high %v578_v48, %v580_v49  ;;  %v532_v54 = vrot.slane %v525_v50, 4  ;;  %v356_v48 = vsel %vm1414_vm4, %v1426_v15, 0 }
 0x12c   : > { %v1049_v59 = vcombine.low %v355_v44, %v356_v48  ;;  %vm646_vm4 = vcmask 769024  }
 0x12d   : > { %v531_v55 = vpop.permute.xlu0 %530  ;;  %775 = vmatprep.subr.bf16.mxu0 %v1062_v52  ;;  %v536_v60 = vsel %vm379_vm13, %v532_v54, %v533_v53  ;;  %v1050_v54 = vcombine.high %v355_v44, %v356_v48 }
 0x12e   : > { %v535_v56 = vrot.slane %v531_v55, 4  ;;  %776 = vmatpush1.bf16.msra.mxu0 %v1061_v51  ;;  %v529_v57 = vpop.permute.xlu1 %528  ;;  %v538_v2 = vsel %vm537_vm10, %v525_v50, %v536_v60  ;;  %v382_v51 = vsel %vm381_vm14, %v1525_v32, %v380_v38 }
 0x12f   : > { %v534_v61 = vrot.slane %v529_v57, 4 }
 0x131   : > { %v539_v62 = vsel %vm379_vm13, %v534_v61, %v535_v56  ;;  %v458_v63 = vpop.permute.xlu0 %457 }
 0x132   : > { %v540_v3 = vsel %vm537_vm10, %v529_v57, %v539_v62  ;;  %v456_v4 = vpop.permute.xlu1 %455  ;;  %v464_v7 = vrot.slane %v458_v63, 4 }
 0x133   : > { %v1059_v5 = vcombine.low %v538_v2, %v540_v3  ;;  %v1060_v6 = vcombine.high %v538_v2, %v540_v3  ;;  %v463_v8 = vrot.slane %v456_v4, 4  ;;  %v1047_v2 = vcombine.low %v1509_v19, %v1509_v19 }
 0x135   : > { %v462_v11 = vpop.permute.xlu0 %461  ;;  %777 = vmatprep.subr.bf16.mxu0 %v1060_v6  ;;  %v467_v16 = vsel %vm379_vm13, %v463_v8, %v464_v7 }
 0x136   : > { %v466_v12 = vrot.slane %v462_v11, 4  ;;  %778 = vmatpush1.bf16.msra.mxu0 %v1059_v5  ;;  %v460_v14 = vpop.permute.xlu1 %459  ;;  %v469_v22 = vsel %vm468_vm11, %v456_v4, %v467_v16 }
 0x137   : > { %v465_v17 = vrot.slane %v460_v14, 4  ;;  %779 = vmatprep.subr.bf16.mxu0 %v1058_v9 }
 0x139   : > { %v470_v20 = vsel %vm379_vm13, %v465_v17, %v466_v12  ;;  %v417_v21 = vpop.permute.xlu0 %416 }
 0x13a   : > { %v471_v23 = vsel %vm468_vm11, %v460_v14, %v470_v20  ;;  %780 = vmatpush1.bf16.msra.mxu0 %v1057_v18  ;;  %v415_v24 = vpop.permute.xlu1 %414  ;;  %v423_v27 = vrot.slane %v417_v21, 4 }
 0x13b   : > { %v1055_v25 = vcombine.low %v469_v22, %v471_v23  ;;  %v1056_v26 = vcombine.high %v469_v22, %v471_v23  ;;  %v422_v28 = vrot.slane %v415_v24, 4 }
 0x13d   : > { %v421_v33 = vpop.permute.xlu0 %420  ;;  %781 = vmatprep.subr.bf16.mxu0 %v1056_v26  ;;  %v426_v36 = vsel %vm379_vm13, %v422_v28, %v423_v27 }
 0x13e   : > { %v425_v34 = vrot.slane %v421_v33, 4  ;;  %782 = vmatpush1.bf16.msra.mxu0 %v1055_v25  ;;  %v419_v35 = vpop.permute.xlu1 %418  ;;  %v428_v41 = vsel %vm427_vm12, %v415_v24, %v426_v36 }
 0x13f   : > { %v424_v37 = vrot.slane %v419_v35, 4 }
 0x141   : > { %v429_v39 = vsel %vm379_vm13, %v424_v37, %v425_v34  ;;  %v374_v40 = vpop.permute.xlu0 %373 }
 0x142   : > { %v430_v42 = vsel %vm427_vm12, %v419_v35, %v429_v39  ;;  %v378_v31 = vrot.slane %v374_v40, 4  ;;  %v372_v43 = vpop.permute.xlu1 %371 }
 0x143   : > { %v1053_v45 = vcombine.low %v428_v41, %v430_v42  ;;  %v1054_v46 = vcombine.high %v428_v41, %v430_v42  ;;  %v377_v47 = vrot.slane %v372_v43, 4 }
 0x145   : > { %v383_v49 = vsel %vm379_vm13, %v377_v47, %v378_v31  ;;  %v636_v50 = vpop.permute.xlu0 %635  ;;  %783 = vmatprep.subr.bf16.mxu0 %v1054_v46 }
 0x146   : > { %v384_v52 = vsel %vm381_vm14, %v372_v43, %v383_v49  ;;  %784 = vmatpush1.bf16.msra.mxu0 %v1053_v45  ;;  %v634_v53 = vpop.permute.xlu1 %633  ;;  %v642_v56 = vrot.slane %v636_v50, 4 }
 0x147   : > { %v1051_v13 = vcombine.low %v382_v51, %v384_v52  ;;  %v1052_v55 = vcombine.high %v382_v51, %v384_v52  ;;  %v641_v57 = vrot.slane %v634_v53, 4 }
 0x149   : > { %v640_v58 = vpop.permute.xlu0 %639  ;;  %785 = vmatprep.subr.bf16.mxu0 %v1052_v55  ;;  %v645_v60 = vsel %vm379_vm13, %v641_v57, %v642_v56 }
 0x14a   : > { %v644_v10 = vrot.slane %v640_v58, 4  ;;  %786 = vmatpush1.bf16.msra.mxu0 %v1051_v13  ;;  %v638_v15 = vpop.permute.xlu1 %637  ;;  %v647_v62 = vsel %vm646_vm4, %v634_v53, %v645_v60 }
 0x14b   : > { %v643_v61 = vrot.slane %v638_v15, 4  ;;  %787 = vmatprep.subr.bf16.mxu0 %v1050_v54 }
 0x14d   : > { %v648_v32 = vsel %vm379_vm13, %v643_v61, %v644_v10 }
 0x14e   : > { %v649_v63 = vsel %vm646_vm4, %v638_v15, %v648_v32  ;;  %788 = vmatpush1.bf16.msra.mxu0 %v1049_v59 }
 0x14f   : > { %v1065_v0 = vcombine.low %v647_v62, %v649_v63  ;;  %v1066_v1 = vcombine.high %v647_v62, %v649_v63 }
 0x151   : > { %803 = vmatprep.subr.bf16.mxu0 %v1066_v1 }
 0x152   : > { %804 = vmatpush2.bf16.msra.mxu0 %v1065_v0 }
 0x155   : > { %806 = vmatmul.mubr.bf16.vlgmr.msra.gmra.mxu0 %v1047_v2 }
 0x156   : > { %v826_v5 = vpop.permute.xlu0 %825 }
 0x157   : > { %v818_v3 = vpop.permute.xlu1 %817 }
 0x215   : > { %v807_v4 = vpop.f32.mrf.mxu0 }
 0x216   : > { %v820_v6 = vmul.f32 %v818_v3, %v807_v4 }
 0x217   : > { %v809_v7 = vpop.f32.mrf.mxu0 }
 0x218   : > { %v828_v8 = vadd.f32 %v826_v5, %v820_v6  ;;  %v821_v9 = vmul.f32 %v818_v3, %v809_v7 }
 0x219   : > { %v811_v11 = vpop.f32.mrf.mxu0 }
 0x21a   : > { %v830_v12 = vmul.f32 0.70710677, %v828_v8  ;;  %v829_v14 = vadd.f32 %v826_v5, %v821_v9  ;;  %v876_v58 = vmul.f32 0.5, %v828_v8 }
 0x21b   : > { %v812_v16 = vpop.f32.mrf.mxu0 }
 0x21c   : > { %v832_v17 = vand.u32 2147483647, %v830_v12  ;;  %v831_v18 = vmul.f32 0.70710677, %v829_v14  ;;  %vm870_vm13 = vcmp.ge.f32.partialorder %v830_v12, 0.0  ;;  %v877_v61 = vmul.f32 0.5, %v829_v14 }
 0x21e   : > { %v834_v20 = vmul.f32 0.3275911, %v832_v17  ;;  %v833_v21 = vand.u32 2147483647, %v831_v18  ;;  %v858_v24 = vsub.f32 0.0, %v832_v17  ;;  %vm871_vm15 = vcmp.ge.f32.partialorder %v831_v18, 0.0 }
 0x220   : > { %v836_v22 = vadd.f32 1.0, %v834_v20  ;;  %v835_v23 = vmul.f32 0.3275911, %v833_v21  ;;  %v859_v25 = vsub.f32 0.0, %v833_v21  ;;  %v860_v26 = vmul.f32 %v858_v24, %v832_v17 }
 0x222   : > { %1159 = vrcp.f32 %v836_v22  ;;  %v837_v19 = vadd.f32 1.0, %v835_v23  ;;  %v861_v28 = vmul.f32 %v859_v25, %v833_v21  ;;  %v862_v30 = vmul.f32 1.442695, %v860_v26 }
 0x224   : > { %1161 = vrcp.f32 %v837_v19  ;;  %v864_v36 = vmul.f32 1.442695, %v861_v28 }
 0x225   : > { %1163 = vpow2.f32 %v862_v30 }
 0x226   : > { %1165 = vpow2.f32 %v864_v36 }
 0x22f   : > { %v1160_v27 = vpop.eup %1159 }
 0x230   : > { %v840_v29 = vmul.f32 1.0614054, %v1160_v27 }
 0x231   : > { %v1162_v33 = vpop.eup %1161 }
 0x232   : > { %v842_v34 = vadd.f32 -1.4531521, %v840_v29  ;;  %v841_v35 = vmul.f32 1.0614054, %v1162_v33  ;;  %v1164_v49 = vpop.eup %1163 }
 0x233   : > { %v1166_v53 = vpop.eup %1165 }
 0x234   : > { %v844_v37 = vmul.f32 %v1160_v27, %v842_v34  ;;  %v843_v38 = vadd.f32 -1.4531521, %v841_v35 }
 0x236   : > { %v846_v39 = vadd.f32 1.4214138, %v844_v37  ;;  %v845_v40 = vmul.f32 %v1162_v33, %v843_v38 }
 0x238   : > { %v848_v41 = vmul.f32 %v1160_v27, %v846_v39  ;;  %v847_v42 = vadd.f32 1.4214138, %v845_v40 }
 0x23a   : > { %v850_v31 = vadd.f32 -0.28449672, %v848_v41  ;;  %v849_v43 = vmul.f32 %v1162_v33, %v847_v42 }
 0x23c   : > { %v852_v44 = vmul.f32 %v1160_v27, %v850_v31  ;;  %v851_v45 = vadd.f32 -0.28449672, %v849_v43 }
 0x23e   : > { %v854_v46 = vadd.f32 0.2548296, %v852_v44  ;;  %v853_v47 = vmul.f32 %v1162_v33, %v851_v45 }
 0x240   : > { %v856_v48 = vmul.f32 %v1160_v27, %v854_v46  ;;  %v855_v50 = vadd.f32 0.2548296, %v853_v47 }
 0x242   : > { %v866_v51 = vmul.f32 %v1164_v49, %v856_v48  ;;  %v857_v52 = vmul.f32 %v1162_v33, %v855_v50 }
 0x244   : > { %v868_v54 = vsub.f32 1.0, %v866_v51  ;;  %v867_v13 = vmul.f32 %v1166_v53, %v857_v52 }
 0x246   : > { %v872_v55 = vsub.f32 0.0, %v868_v54  ;;  %v869_v56 = vsub.f32 1.0, %v867_v13 }
 0x248   : > { %v874_v57 = vsel %vm870_vm13, %v868_v54, %v872_v55  ;;  %v873_v15 = vsub.f32 0.0, %v869_v56 }
 0x249   : > { %v878_v10 = vadd.f32 1.0, %v874_v57 }
 0x24a   : > { %v875_v60 = vsel %vm871_vm15, %v869_v56, %v873_v15 }
 0x24b   : > { %v880_v59 = vmul.f32 %v878_v10, %v876_v58  ;;  %v879_v32 = vadd.f32 1.0, %v875_v60 }
 0x24d   : > { %882 = vst [vmem:[%s283_s21] sm:$0xff] %v880_v59  ;;  %v881_v62 = vmul.f32 %v879_v32, %v877_v61 }
 0x24f   : > { %883 = vst [vmem:[%s283_s21 + $0x8] sm:$0xff] %v881_v62 }
 0x250   : > { %1208 = shalt.err (!%p1205_p6)
}
 0x251   : > { %s1209_s8 = scalar_lea.hbm %s901_s26, 256  ;;  %s1213_s12 = scalar_lea.hbm %s1599_s4, 512 }
 0x252   : > { %p1210_p4 = scmp.ne.s32.totalorder %s901_s26, %s1209_s8  ;;  %p1214_p13 = scmp.lt.s32.totalorder %s901_s26, %s1599_s4 }
 0x253   : > { %p1215_p2 = scmp.lt.s32.totalorder %s1213_s12, %s1209_s8 }
 0x254   : > { %p1211_p7 = pnand %p1210_p4, %p1371_p9 }
 0x255   : > { %p1216_p8 = por %p1215_p2, %p1214_p13 }
 0x256   : > { %p1212_p10 = pneg %p1211_p7 }
 0x258   : > { %p1217_p12 = pnand %p1216_p8, %p1212_p10 }
 0x25a   : > { %1220 = shalt.err (!%p1217_p12)
}
 0x25b   : > { %1079 = dma.vmem_to_hbm [thread:$0]  (%p1371_p9), %s904_s22, 256, %s901_s26, %s885_s5  }
 0x25c PF: > { %s915_s14 = sand.u32 1, %s1255_s15   ;;  %p1615_p0 = scmp.ge.s32.totalorder %s1275_s20, 2 }
 0x25d   : > { %s916_s21 = scalar_lea.sflag [#allocation5], %s915_s14 }
 0x25e   : > { %p1086_p1 = pnand %p1615_p0, %p1378_p11 }
 0x260   : > { %p1087_p3 = pneg %p1086_p1 }
 0x262   : > { %1250 = dma.done.wait (%p1087_p3), %s916_s21, 256  }
 0x263   : > { %1252 = vsyncadd (%p1087_p3), %s916_s21, 4294967040  ;;  %s20_s20 = sadd.s32 1, %s1275_s20   ;;  %s1616_s15 = smov %s1259_s16 }
 0x264   : > { %p17_p5 = scmp.ge.s32.totalorder %s20_s20, 4   ;;  %s1617_s16 = smov %s1263_s17 }
 0x265   : > { %s1618_s17 = smov %s1376_s29  ;;  %s1619_s18 = smov %s1271_s19 }
 0x266   : > { %s1620_s19 = smov %s1622_s23  ;;  %19 = sbr.rel (!%p17_p5) target bundleno = 6 (0x6), region = 94 }
 0x26b   :  { %921 = vsyncpa [#allocation4], 1 }
 0x26c   :  { %923 = vsyncpa [#allocation4 + $0x1], 1 }
 0x26d   :  { %924 = vsyncpa [#allocation5], 1 }
 0x26e   :  { %926 = vsyncpa [#allocation5 + $0x1], 1 }

</bundles_post_ra>
